<compile_context>
chip_gen: v7x
topology: tpu7x:2x2x1
jax: 0.10.0
libtpu: 0.0.40
codegen_flags: <defaults>
</compile_context>

<pallas_src>
import functools
import math

import jax
import jax.numpy as jnp
from jax.experimental import pallas as pl
from jax.experimental.pallas import tpu as pltpu


_LOG_2PI = math.log(2.0 * math.pi)


def _round_up(x, m):
    return ((x + m - 1) // m) * m


def _cdiv(a, b):
    return -(-a // b)


def _choose_tile(batch, dim, target_block_bytes):
    """Pick a batch-row tile (multiple of 8 sublanes) with ~target_block_bytes f32 blocks."""
    tb = max(8, (target_block_bytes // (dim * 4)) // 8 * 8)
    tb = min(tb, _round_up(batch, 8))          # never more rows than the batch needs
    ntiles = _cdiv(batch, tb)
    # v7x megacore: the "parallel" batch-tile axis is sharded across 2 TensorCores;
    # prefer an even tile count so neither core idles through a tail tile.
    # (v5e / v6e are single-TC, so this is a no-op cost there.)
    if ntiles > 1 and ntiles % 2 == 1:
        tb = max(8, _round_up(_cdiv(batch, ntiles + 1), 8))
        ntiles = _cdiv(batch, tb)
    return tb, ntiles


def _diag_gaussian_kernel(means_ref, presig_ref, eps_ref, sample_ref, logp_ref,
                          *, std_min, std_max, dim, fast_quad):
    # ---- parameter row (1, D) --------------------------------------------------
    # Recomputed every grid step on purpose: it is a single row of EUP/XLU work
    # (free filler in this HBM-bound kernel) and stays correct when the batch-tile
    # axis is sharded across TensorCores ("parallel" on v7x megacore).
    means = means_ref[...]                        # (1, D) f32
    presig = presig_ref[...]                      # (1, D) f32

    # Overflow-safe sigmoid: one exp (EUP) + one exact row reciprocal, no
    # full-width VALU divide.
    t = jnp.exp(-jnp.abs(presig))                 # in (0, 1]
    inv_1pt = pl.reciprocal(1.0 + t)              # (1, D), exact
    sig = jnp.where(presig >= 0.0, inv_1pt, t * inv_1pt)

    # NOTE: faithful to the PyTorch module — with the default std_min = -1 this
    # goes negative whenever sigmoid(presig) < 1/11, and sqrt/log then produce
    # NaN exactly as torch's MultivariateNormal would misbehave. No clamp added.
    var = std_min + sig * (std_max - std_min)     # diagonal of the covariance
    std = jnp.sqrt(var)                           # diagonal Cholesky factor
    logdet = jnp.sum(jnp.log(var), axis=-1, keepdims=True)        # (1, 1)

    # ---- rsample: mu + L @ eps (L diagonal -> elementwise) ----------------------
    eps = eps_ref[...]                            # (tb, D) streamed tile
    sample = means + std * eps
    sample_ref[...] = sample

    # ---- log_prob of the diagonal-covariance MVN --------------------------------
    if fast_quad:
        # (x - mu) == std * eps  =>  (x - mu)^2 / var == eps^2  (differs only at
        # the ~1-ulp level from the torch path); saves two (tb, D) temporaries.
        quad = jnp.sum(eps * eps, axis=-1, keepdims=True)          # (tb, 1)
    else:
        inv_var = pl.reciprocal(var)              # (1, D): D recips, not tb*D divides
        diff = sample - means                     # torch-style (x - mu) path
        quad = jnp.sum(diff * diff * inv_var, axis=-1, keepdims=True)

    logp_ref[...] = -0.5 * (quad + logdet + dim * _LOG_2PI)        # (tb, 1)


def diagonal_gaussian_forward(means, pre_sigmoid_std, eps,
                              std_min=-1.0, std_max=10.0, *,
                              fast_quad=True,
                              target_block_bytes=2 * 1024 * 1024):
    """Returns (sample[B, D], log_prob[B]) exactly like DiagonalGaussian.forward."""
    means2 = jnp.asarray(means, jnp.float32).reshape(1, -1)
    presig2 = jnp.asarray(pre_sigmoid_std, jnp.float32).reshape(1, -1)
    eps = jnp.asarray(eps, jnp.float32)
    assert eps.ndim == 2
    batch, dim = eps.shape
    assert means2.shape == (1, dim) and presig2.shape == (1, dim)

    tb, ntiles = _choose_tile(batch, dim, target_block_bytes)

    # Double-buffered VMEM footprint: eps-in + sample-out blocks (x2 each),
    # (tb, 1) logp blocks (x2) and the two resident (1, D) parameter rows.
    # Cap at 48 MiB so the heuristic never exceeds v7x's 64 MiB physical VMEM.
    dbuf = 2 * (2 * tb * dim * 4 + tb * 4) + 2 * (2 * dim * 4)
    vmem_limit = int(min(48 * 1024 * 1024, max(32 * 1024 * 1024, dbuf + (8 << 20))))

    kernel = functools.partial(
        _diag_gaussian_kernel,
        std_min=float(std_min), std_max=float(std_max), dim=dim,
        fast_quad=bool(fast_quad))

    sample, logp = pl.pallas_call(
        kernel,
        grid=(ntiles,),
        in_specs=[
            pl.BlockSpec((1, dim), lambda i: (0, 0)),     # means (resident row)
            pl.BlockSpec((1, dim), lambda i: (0, 0)),     # pre_sigmoid_std (resident row)
            pl.BlockSpec((tb, dim), lambda i: (i, 0)),    # eps (streamed batch tile)
        ],
        out_specs=(
            pl.BlockSpec((tb, dim), lambda i: (i, 0)),    # sample
            pl.BlockSpec((tb, 1), lambda i: (i, 0)),      # log_prob column
        ),
        out_shape=(
            jax.ShapeDtypeStruct((batch, dim), jnp.float32),
            jax.ShapeDtypeStruct((batch, 1), jnp.float32),
        ),
        compiler_params=pltpu.CompilerParams(
            dimension_semantics=("parallel",),            # megacore sharding on v7x
            vmem_limit_bytes=vmem_limit),
    )(means2, presig2, eps)

    return sample, logp[:, 0]


def _reference(means, pre_sigmoid_std, eps, std_min, std_max):
    """Pure-JAX reference with the PyTorch module's math."""
    D = eps.shape[-1]
    var = std_min + jax.nn.sigmoid(pre_sigmoid_std) * (std_max - std_min)
    sample = means + jnp.sqrt(var) * eps
    diff = sample - means
    logp = (-0.5 * jnp.sum(diff * diff / var, axis=-1)
            - 0.5 * jnp.sum(jnp.log(var))
            - 0.5 * D * _LOG_2PI)
    return sample, logp


if __name__ == "__main__":
    key = jax.random.PRNGKey(0)
    k1, k2 = jax.random.split(key)

    # Case 1: the module's default tiny shape (dim=5, batch=8), single tile.
    dim, batch = 5, 8
    means = jnp.zeros((dim,), jnp.float32)
    presig = jnp.ones((dim,), jnp.float32) * (-1.0)
    eps = jax.random.normal(k1, (batch, dim), dtype=jnp.float32)

    sample, log_prob = diagonal_gaussian_forward(means, presig, eps,
                                                 std_min=-1.0, std_max=10.0)
    jax.block_until_ready((sample, log_prob))
    ref_s, ref_lp = _reference(means, presig, eps, -1.0, 10.0)
    assert sample.shape == (batch, dim) and log_prob.shape == (batch,)
    assert jnp.allclose(sample, ref_s, atol=1e-5, rtol=1e-5)
    assert jnp.allclose(log_prob, ref_lp, atol=1e-3, rtol=1e-5)

    # Case 1b: torch-exact (x - mu)^2 / var path.
    sample_b, log_prob_b = diagonal_gaussian_forward(means, presig, eps,
                                                     std_min=-1.0, std_max=10.0,
                                                     fast_quad=False)
    jax.block_until_ready((sample_b, log_prob_b))
    assert jnp.allclose(sample_b, ref_s, atol=1e-5, rtol=1e-5)
    assert jnp.allclose(log_prob_b, ref_lp, atol=1e-3, rtol=1e-5)

    # Case 2: non-128-multiple dim + non-multiple-of-8 batch, one big ragged tile.
    dim2, batch2 = 130, 1050
    means2 = 0.1 * jnp.arange(dim2, dtype=jnp.float32)
    presig2 = jnp.linspace(-1.0, 1.0, dim2, dtype=jnp.float32)
    eps2 = jax.random.normal(k2, (batch2, dim2), dtype=jnp.float32)

    sample2, log_prob2 = diagonal_gaussian_forward(means2, presig2, eps2,
                                                   std_min=-1.0, std_max=10.0)
    jax.block_until_ready((sample2, log_prob2))
    ref_s2, ref_lp2 = _reference(means2, presig2, eps2, -1.0, 10.0)
    assert sample2.shape == (batch2, dim2) and log_prob2.shape == (batch2,)
    assert jnp.allclose(sample2, ref_s2, atol=1e-5, rtol=1e-5)
    assert jnp.allclose(log_prob2, ref_lp2, atol=2e-3, rtol=1e-5)

    # Case 3: force a multi-tile grid (even tile count, ragged last tile).
    sample3, log_prob3 = diagonal_gaussian_forward(means2, presig2, eps2,
                                                   std_min=-1.0, std_max=10.0,
                                                   target_block_bytes=128 * 1024)
    jax.block_until_ready((sample3, log_prob3))
    assert jnp.allclose(sample3, ref_s2, atol=1e-5, rtol=1e-5)
    assert jnp.allclose(log_prob3, ref_lp2, atol=2e-3, rtol=1e-5)

    print("KERNEL_OK")
</pallas_src>

<mosaic_0001>
module attributes {stable_mosaic.version = 11 : i64} {
  func.func @_diag_gaussian_kernel(%arg0: i32, %arg1: memref<1x5xf32, #tpu.memory_space<vmem>>, %arg2: memref<1x5xf32, #tpu.memory_space<vmem>>, %arg3: memref<8x5xf32, #tpu.memory_space<vmem>>, %arg4: memref<8x5xf32, #tpu.memory_space<vmem>>, %arg5: memref<8x1xf32, #tpu.memory_space<vmem>>) attributes {dimension_semantics = [#tpu.dimension_semantics<parallel>], iteration_bounds = array<i64: 1>, scalar_prefetch = 0 : i64, scratch_operands = 0 : i64, tpu.core_type = #tpu.core_type<tc>, window_params = [{pipeline_mode = #tpu.pipeline_mode<synchronous>, transform_indices = @transform_0, window_bounds = array<i64: 1, 5>}, {pipeline_mode = #tpu.pipeline_mode<synchronous>, transform_indices = @transform_1, window_bounds = array<i64: 1, 5>}, {transform_indices = @transform_2, window_bounds = array<i64: 8, 5>}, {transform_indices = @transform_3, window_bounds = array<i64: 8, 5>}, {transform_indices = @transform_4, window_bounds = array<i64: 8, 1>}]} {
    %c0 = arith.constant 0 : index
    %c0_0 = arith.constant 0 : index
    %0 = vector.load %arg1[%c0, %c0_0] : memref<1x5xf32, #tpu.memory_space<vmem>>, vector<1x5xf32>
    %c0_1 = arith.constant 0 : index
    %c0_2 = arith.constant 0 : index
    %1 = vector.load %arg2[%c0_1, %c0_2] : memref<1x5xf32, #tpu.memory_space<vmem>>, vector<1x5xf32>
    %2 = math.absf %1 : vector<1x5xf32>
    %cst = arith.constant 0.000000e+00 : f32
    %3 = vector.broadcast %cst : f32 to vector<1x5xf32>
    %4 = arith.subf %3, %2 : vector<1x5xf32>
    %5 = math.exp %4 : vector<1x5xf32>
    %cst_3 = arith.constant 1.000000e+00 : f32
    %6 = vector.broadcast %cst_3 : f32 to vector<1x5xf32>
    %7 = arith.addf %6, %5 : vector<1x5xf32>
    %8 = tpu.reciprocal %7 : vector<1x5xf32> -> vector<1x5xf32>
    %cst_4 = arith.constant 0.000000e+00 : f32
    %9 = vector.broadcast %cst_4 : f32 to vector<1x5xf32>
    %10 = arith.cmpf oge, %1, %9 : vector<1x5xf32>
    %11 = arith.mulf %5, %8 : vector<1x5xf32>
    %12 = arith.select %10, %8, %11 : vector<1x5xi1>, vector<1x5xf32>
    %cst_5 = arith.constant 1.100000e+01 : f32
    %13 = vector.broadcast %cst_5 : f32 to vector<1x5xf32>
    %14 = arith.mulf %12, %13 : vector<1x5xf32>
    %cst_6 = arith.constant -1.000000e+00 : f32
    %15 = vector.broadcast %cst_6 : f32 to vector<1x5xf32>
    %16 = arith.addf %15, %14 : vector<1x5xf32>
    %17 = math.sqrt %16 : vector<1x5xf32>
    %18 = math.log %16 : vector<1x5xf32>
    %cst_7 = arith.constant dense<0.000000e+00> : vector<1xf32>
    %19 = vector.multi_reduction <add>, %18, %cst_7 [1] : vector<1x5xf32> to vector<1xf32>
    %20 = vector.shape_cast %19 : vector<1xf32> to vector<1x1xf32>
    %c0_8 = arith.constant 0 : index
    %c0_9 = arith.constant 0 : index
    %21 = vector.load %arg3[%c0_8, %c0_9] : memref<8x5xf32, #tpu.memory_space<vmem>>, vector<8x5xf32>
    %22 = vector.broadcast %17 : vector<1x5xf32> to vector<8x5xf32>
    %23 = arith.mulf %22, %21 : vector<8x5xf32>
    %24 = vector.broadcast %0 : vector<1x5xf32> to vector<8x5xf32>
    %25 = arith.addf %24, %23 : vector<8x5xf32>
    %c0_10 = arith.constant 0 : index
    %c0_11 = arith.constant 0 : index
    %26 = vector.load %arg4[%c0_10, %c0_11] : memref<8x5xf32, #tpu.memory_space<vmem>>, vector<8x5xf32>
    tpu.vector_store %arg4[%c0_10, %c0_11], %25 {strides = array<i32>} : memref<8x5xf32, #tpu.memory_space<vmem>>, vector<8x5xf32>,
    %27 = arith.mulf %21, %21 : vector<8x5xf32>
    %cst_12 = arith.constant dense<0.000000e+00> : vector<8xf32>
    %28 = vector.multi_reduction <add>, %27, %cst_12 [1] : vector<8x5xf32> to vector<8xf32>
    %29 = vector.shape_cast %28 : vector<8xf32> to vector<8x1xf32>
    %30 = vector.broadcast %20 : vector<1x1xf32> to vector<8x1xf32>
    %31 = arith.addf %29, %30 : vector<8x1xf32>
    %cst_13 = arith.constant 9.18938541 : f32
    %32 = vector.broadcast %cst_13 : f32 to vector<8x1xf32>
    %33 = arith.addf %31, %32 : vector<8x1xf32>
    %cst_14 = arith.constant -5.000000e-01 : f32
    %34 = vector.broadcast %cst_14 : f32 to vector<8x1xf32>
    %35 = arith.mulf %34, %33 : vector<8x1xf32>
    %c0_15 = arith.constant 0 : index
    %c0_16 = arith.constant 0 : index
    %36 = vector.load %arg5[%c0_15, %c0_16] : memref<8x1xf32, #tpu.memory_space<vmem>>, vector<8x1xf32>
    tpu.vector_store %arg5[%c0_15, %c0_16], %35 {strides = array<i32>} : memref<8x1xf32, #tpu.memory_space<vmem>>, vector<8x1xf32>,
    return
  }
  func.func @transform_0(%arg0: i32) -> (i32, i32) {
    %c0_i32 = arith.constant 0 : i32
    %c0_i32_0 = arith.constant 0 : i32
    %c0_i32_1 = arith.constant 0 : i32
    return %c0_i32, %c0_i32_0 : i32, i32
  }
  func.func @transform_1(%arg0: i32) -> (i32, i32) {
    %c0_i32 = arith.constant 0 : i32
    %c0_i32_0 = arith.constant 0 : i32
    %c0_i32_1 = arith.constant 0 : i32
    return %c0_i32, %c0_i32_0 : i32, i32
  }
  func.func @transform_2(%arg0: i32) -> (i32, i32) {
    %c0_i32 = arith.constant 0 : i32
    %c0_i32_0 = arith.constant 0 : i32
    return %arg0, %c0_i32 : i32, i32
  }
  func.func @transform_3(%arg0: i32) -> (i32, i32) {
    %c0_i32 = arith.constant 0 : i32
    %c0_i32_0 = arith.constant 0 : i32
    return %arg0, %c0_i32 : i32, i32
  }
  func.func @transform_4(%arg0: i32) -> (i32, i32) {
    %c0_i32 = arith.constant 0 : i32
    %c0_i32_0 = arith.constant 0 : i32
    return %arg0, %c0_i32 : i32, i32
  }
}

</mosaic_0001>

<bundles_post_ra>
// kernel: tpu_custom_call.1
= control target key start
LH: loop header
LB: loop body
LE: loop exit
PB: predicated region body
PF: predicated region fallthrough
CT: control target
= control target key end

     0   :  { %10 = vsyncpa [#allocation3], 0  ;;  %s273_s0 = inlined_call_operand.hbm [shape: f32[1,5], index: 0, kind: input, shape index: {}]   ;;  %s274_s1 = inlined_call_operand.vmem [shape: f32[1,5], index: 1, kind: input, shape index: {}]   ;;  %s275_s2 = inlined_call_operand.hbm [shape: f32[8,5], index: 2, kind: input, shape index: {}]   ;;  %s276_s3 = inlined_call_operand.hbm [shape: f32[8,5], index: 3, kind: output, shape index: {0}]   ;;  %s277_s4 = inlined_call_operand.vmem [shape: f32[8,1], index: 4, kind: output, shape index: {1}]  }
   0x1   :  { %11 = vsyncpa [#allocation6], 0 }
   0x2   :  { %12 = vsyncpa [#allocation4], 0  ;;  %s201_s15 = smov [#allocation2]   ;;  %s202_s17 = smov [#allocation5]  }
   0x3   :  { %s19_s16 = sshll.u32 %s201_s15, 4  ;;  %s31_s18 = sshll.u32 %s202_s17, 4  ;;  %s20_s16 = int_to_ptr.vmem [resolvable:$true] %s19_s16  ;;  %s32_s18 = int_to_ptr.vmem [resolvable:$true] %s31_s18 }
   0x4   :  { %s129_s21 = scalar_lea.hbm %s273_s0, 16 }
   0x5   :  { %p130_p0 = scmp.ne.s32.totalorder %s273_s0, %s129_s21  ;;  %p133_p1 = scmp.lt.u32.totalorder %s129_s21, %s273_s0 }
   0x7   :  { %p135_p2 = pnand %p133_p1, %p130_p0 }
   0x9   :  { %138 = shalt.err (!%p135_p2)
}
   0xa   :  { %s139_s26 = scalar_lea.vmem %s20_s16, 16  ;;  %s143_s27 = scalar_lea.vmem %s20_s16, 32 }
   0xb   :  { %p140_p3 = scmp.ne.s32.totalorder %s20_s16, %s139_s26  ;;  %p144_p4 = scmp.lt.s32.totalorder %s20_s16, %s20_s16 }
   0xc   :  { %p145_p5 = scmp.lt.s32.totalorder %s143_s27, %s139_s26 }
   0xe   :  { %p146_p6 = por %p145_p5, %p144_p4 }
  0x10   :  { %p147_p7 = pnand %p146_p6, %p140_p3 }
  0x12   :  { %150 = shalt.err (!%p147_p7)
}
  0x13   :  { %22 = dma.hbm_to_vmem [thread:$0]  %s273_s0, 16, %s20_s16, [#allocation3]  }
  0x14   :  { %s151_s6 = scalar_lea.hbm %s275_s2, 128 }
  0x15   :  { %p152_p8 = scmp.ne.s32.totalorder %s275_s2, %s151_s6  ;;  %p155_p9 = scmp.lt.u32.totalorder %s151_s6, %s275_s2 }
  0x17   :  { %p157_p10 = pnand %p155_p9, %p152_p8 }
  0x19   :  { %160 = shalt.err (!%p157_p10)
}
  0x1a   :  { %s161_s11 = scalar_lea.vmem %s32_s18, 128  ;;  %p166_p12 = scmp.lt.s32.totalorder %s32_s18, %s32_s18 }
  0x1b   :  { %p162_p11 = scmp.ne.s32.totalorder %s32_s18, %s161_s11  ;;  %p167_p13 = scmp.lt.s32.totalorder %s161_s11, %s161_s11 }
  0x1d   :  { %p168_p0 = por %p167_p13, %p166_p12 }
  0x1f   :  { %p169_p1 = pnand %p168_p0, %p162_p11 }
  0x21   :  { %172 = shalt.err (!%p169_p1)
}
  0x22   :  { %34 = dma.hbm_to_vmem [thread:$0]  %s275_s2, 128, %s32_s18, [#allocation6]  }
  0x23   :  { %195 = dma.done.wait [#allocation3], 16  }
  0x24   :  { %196 = vsyncadd [#allocation3], 4294967280 }
  0x25   :  { %197 = dma.done.wait [#allocation6], 128  }
  0x26   :  { %198 = vsyncadd [#allocation6], 4294967168  ;;  %v42_v0 = vld [vmem:[%s274_s1] sm:$0x1]  ;;  %v67_v11 = vld [vmem:[#allocation5] sm:$0xff]  ;;  %vm63_vm1 = vcmask 32768   ;;  %v69_v17 = vlaneseq }
  0x27   :  { %v43_v1 = vand.u32 2147483647, %v42_v0  ;;  %vm49_vm0 = vcmp.ge.f32.partialorder %v42_v0, 0.0  ;;  %v84_v14 = vmul.f32 %v67_v11, %v67_v11  ;;  %vm82_vm2 = vcmask 39936   ;;  %v117_v27 = vld [vmem:[#allocation2] ss:$0 sm:$0xff] }
  0x28   :  { %v70_v18 = vshrl.u32 %v69_v17, 7  ;;  %s203_s1 = smov [#allocation7]  }
  0x29   :  { %v44_v2 = vsub.f32 0.0, %v43_v1  ;;  %v85_v16 = vsel %vm82_vm2, %v84_v14, 0.0  ;;  %s103_s2 = sshll.u32 %s203_s1, 4  ;;  %s104_s2 = int_to_ptr.vmem [resolvable:$true] %s103_s2 }
  0x2a   :  { %v71_v22 = vsub.s32 0, %v70_v18  ;;  %s173_s15 = scalar_lea.vmem %s104_s2, 128  ;;  %p178_p3 = scmp.lt.s32.totalorder %s104_s2, %s104_s2 }
  0x2b   :  { %v45_v3 = vmul.f32 1.442695, %v44_v2  ;;  %p174_p2 = scmp.ne.s32.totalorder %s104_s2, %s173_s15  ;;  %p179_p4 = scmp.lt.s32.totalorder %s173_s15, %s173_s15 }
  0x2d   :  { %121 = vpow2.f32 %v45_v3  ;;  %p180_p5 = por %p179_p4, %p178_p3 }
  0x2f   :  { %p181_p6 = pnand %p180_p5, %p174_p2 }
  0x37   :  { %v122_v4 = vpop.eup %121 }
  0x38   :  { %v47_v5 = vadd.f32 1.0, %v122_v4 }
  0x3a   :  { %123 = vrcp.f32 %v47_v5 }
  0x44   :  { %v124_v6 = vpop.eup %123 }
  0x45   :  { %v50_v7 = vmul.f32 %v124_v6, %v122_v4 }
  0x47   :  { %v51_v8 = vsel %vm49_vm0, %v124_v6, %v50_v7 }
  0x48   :  { %v52_v9 = vmul.f32 11.0, %v51_v8 }
  0x4a   :  { %v53_v10 = vadd.f32 -1.0, %v52_v9 }
  0x4c   :  { %125 = vlog2.f32 %v53_v10  ;;  %vm56_vm3 = vcmp.eq.f32.partialorder %v53_v10, inf  ;;  %vm58_vm4 = vcmp.eq.f32.partialorder %v53_v10, 0.0  ;;  %v59_v21 = vand.u32 2147483648, %v53_v10 }
  0x4d   :  { %127 = vrsqrt.f32 %v53_v10 }
  0x56   :  { %v126_v12 = vpop.eup %125 }
  0x57   :  { %v62_v13 = vmul.f32 0.6931472, %v126_v12  ;;  %v128_v19 = vpop.eup %127 }
  0x58   :  { %v55_v20 = vmul.f32 %v128_v19, %v53_v10 }
  0x59   :  { %v64_v15 = vsel %vm63_vm1, %v62_v13, 0.0 }
  0x5a   :  { %65 = vadd.xlane.f32.xlu0 %v64_v15  ;;  %v57_v23 = vsel %vm56_vm3, %v53_v10, %v55_v20 }
  0x5b   :  { %v60_v24 = vsel %vm58_vm4, %v59_v21, %v57_v23 }
  0x5c   :  { %v72_v25 = vrot.slane %v60_v24, %v71_v22 }
  0x5e   :  { %86 = vadd.xlane.f32.xlu0 %v85_v16  ;;  %v74_v26 = vmul.f32 %v72_v25, %v67_v11 }
  0x60   :  { %v81_v28 = vadd.f32 %v117_v27, %v74_v26 }
  0x62   :  { %83 = vst.msk [vmem:[#allocation7] sm:$0xff] %vm82_vm2, %v81_v28 }
  0x63   :  { %184 = shalt.err (!%p181_p6)
}
  0x64   :  { %s185_s18 = scalar_lea.hbm %s276_s3, 128 }
  0x65   :  { %p186_p7 = scmp.ne.s32.totalorder %s276_s3, %s185_s18  ;;  %p189_p8 = scmp.lt.u32.totalorder %s185_s18, %s276_s3 }
  0x67   :  { %p191_p9 = pnand %p189_p8, %p186_p7 }
  0x69   :  { %194 = shalt.err (!%p191_p9)
}
  0x6a   :  { %106 = dma.vmem_to_hbm [thread:$0]  %s104_s2, 128, %s276_s3, [#allocation4]   ;;  %vm95_vm5 = vcmask 7168  }
  0xe7   :  { %v66_v29 = vpop.xlane.xlu0 %65 }
  0xe8   :  { %v91_v30 = vrot.slane %v66_v29, %v71_v22 }
  0xeb   :  { %v87_v31 = vpop.xlane.xlu0 %86 }
  0xec   :  { %v92_v32 = vadd.f32 %v91_v30, %v87_v31 }
  0xee   :  { %v93_v33 = vadd.f32 9.189385, %v92_v32 }
  0xf0   :  { %v94_v34 = vmul.f32 -0.5, %v93_v33 }
  0xf2   :  { %96 = vst.msk [vmem:[%s277_s4] sm:$0xff] %vm95_vm5, %v94_v34 }
  0xf3   :  { %199 = dma.done.wait [#allocation4], 128  }
  0xf4   :  { %200 = vsyncadd [#allocation4], 4294967168 }
  0xf5   :  { %114 = vsyncpa [#allocation3], 1 }
  0xf6   :  { %115 = vsyncpa [#allocation6], 1 }
  0xf7   :  { %116 = vsyncpa [#allocation4], 1 }

</bundles_post_ra>
